<compile_context>
chip_gen: v6e
topology: v6e:2x2x1
jax: 0.10.0
libtpu: 0.0.40
codegen_flags: <defaults>
</compile_context>

<pallas_src>
import jax
import jax.numpy as jnp
import numpy as np
from jax import lax
from jax.experimental import pallas as pl
from jax.experimental.pallas import tpu as pltpu


def emb_lstm_fc_kernel(ids_ref, table_ref, w_hh_ref, w_fc_ref, b_fc_ref,
                       out_ref):
    """In-kernel embedding gather (one-hot matmul against the pre-projected
    table), fully unrolled LSTM recurrence with (h, c) register-carried,
    FC fused on the final hidden state."""
    TB = ids_ref.shape[0]            # T * B (time-major, batch-fast)
    Vp, G = table_ref.shape          # padded vocab, 4*H (gate order i, f, g, o)
    H = w_hh_ref.shape[0]
    B = out_ref.shape[0]
    T = TB // B

    # --- Embedding gather for ALL timesteps: one (T*B, Vp) @ (Vp, 4H) matmul.
    # table already holds emb @ w_ih + (b_ih + b_hh), with g columns doubled.
    # Off the serial h/c critical path; result stays in vregs (no VMEM stash).
    ids = ids_ref[...]                                               # (T*B, 1)
    vocab = lax.broadcasted_iota(jnp.int32, (TB, Vp), 1)
    onehot = jnp.where(ids == vocab, 1.0, 0.0).astype(jnp.float32)   # (T*B, Vp)
    x_all = jnp.dot(onehot, table_ref[...],
                    preferred_element_type=jnp.float32)              # (T*B, 4H)

    w_hh = w_hh_ref[...]             # (H, 4H), g columns pre-doubled

    # TODO(synk): hold w_hh resident in the MXU across the T steps via
    # pltpu.matmul_push_rhs / matmul_acc_lhs / matmul_pop once that path is
    # validated; jnp.dot re-pushes the 32x128 RHS every serial iteration.
    # TODO(synk): at large T, replace the static Python loop with
    # lax.fori_loop(..., unroll=4..8) to bound code size / vreg live ranges;
    # at large vocab, replace the one-hot gather with a scalar-prefetch +
    # dynamic-row (or DMA) gather.
    h = jnp.zeros((B, H), jnp.float32)
    c = jnp.zeros((B, H), jnp.float32)
    for t in range(T):                                   # fully unrolled (T small)
        x_t = x_all[t * B:(t + 1) * B, :]                # static 1-vreg slice
        gates = x_t + jnp.dot(h, w_hh, preferred_element_type=jnp.float32)
        sig = jax.nn.sigmoid(gates)                      # ONE full-lane EUP op/step
        i_g = sig[:, 0 * H:1 * H]
        f_g = sig[:, 1 * H:2 * H]
        g_g = 2.0 * sig[:, 2 * H:3 * H] - 1.0            # tanh(x) = 2*sigmoid(2x) - 1
        o_g = sig[:, 3 * H:4 * H]
        c = f_g * c + i_g * g_g
        h = o_g * jnp.tanh(c)                            # quarter-vreg tanh

    # fc(output[:, -1, :]) with lane-dense (128-col padded) weights/bias/out.
    out_ref[...] = (jnp.dot(h, w_fc_ref[...],
                            preferred_element_type=jnp.float32)
                    + b_fc_ref[...]).astype(out_ref.dtype)


def prepare_kernel_params(params):
    """Fold w_ih and the combined LSTM bias into the embedding table, pre-double
    the g-gate columns (tanh-via-sigmoid trick), pad for lane/sublane alignment."""
    H = params["w_hh"].shape[0]
    G = 4 * H
    LANES = 128
    # Gate order (i, f, g, o); scale the g block by 2 so tanh(x)=2*sigmoid(2x)-1.
    g_scale = jnp.ones((1, G), jnp.float32).at[:, 2 * H:3 * H].set(2.0)

    table = (params["emb"] @ params["w_ih"] + params["b"]) * g_scale   # (V, 4H)
    V = table.shape[0]
    Vp = ((V + 7) // 8) * 8                                            # sublane pad
    table = jnp.pad(table, ((0, Vp - V), (0, 0)))

    w_hh = params["w_hh"] * g_scale                                    # (H, 4H)

    C = params["w_fc"].shape[1]
    w_fc = jnp.pad(params["w_fc"], ((0, 0), (0, LANES - C)))           # (H, 128)
    b_fc = jnp.pad(params["b_fc"], ((0, 0), (0, LANES - C)))           # (1, 128)
    return table, w_hh, w_fc, b_fc


def emb_forward(token_ids, params):
    """token_ids: (B, T) int32.  Returns (B, num_factory) float32."""
    B, T = token_ids.shape
    C = params["w_fc"].shape[1]
    table, w_hh, w_fc_p, b_fc_p = prepare_kernel_params(params)

    # Time-major flattened ids, (T*B, 1): the only per-token HBM traffic.
    ids_tb = token_ids.T.reshape(T * B, 1).astype(jnp.int32)

    vmem = pl.BlockSpec(memory_space=pltpu.MemorySpace.VMEM)
    out_padded = pl.pallas_call(
        emb_lstm_fc_kernel,
        out_shape=jax.ShapeDtypeStruct((B, 128), jnp.float32),
        in_specs=[vmem] * 5,
        out_specs=vmem,
    )(ids_tb, table, w_hh, w_fc_p, b_fc_p)
    return out_padded[:, :C]


def ref_forward(token_ids, params):
    """Pure-JAX f32 reference of Emb.forward (fused gate layout, gate order i,f,g,o)."""
    x = jnp.take(params["emb"], token_ids, axis=0)        # (B, T, E)
    B, T, _ = x.shape
    H = params["w_hh"].shape[0]
    h = jnp.zeros((B, H), jnp.float32)
    c = jnp.zeros((B, H), jnp.float32)
    for t in range(T):
        gates = x[:, t, :] @ params["w_ih"] + h @ params["w_hh"] + params["b"]
        i = jax.nn.sigmoid(gates[:, 0 * H:1 * H])
        f = jax.nn.sigmoid(gates[:, 1 * H:2 * H])
        g = jnp.tanh(gates[:, 2 * H:3 * H])
        o = jax.nn.sigmoid(gates[:, 3 * H:4 * H])
        c = f * c + i * g
        h = o * jnp.tanh(c)
    return h @ params["w_fc"] + params["b_fc"]


def init_params(key, vocab_size, embedding_size, hidden_size, num_factory):
    ks = jax.random.split(key, 7)
    bound = 1.0 / np.sqrt(hidden_size)
    G = 4 * hidden_size
    params = {
        # nn.Embedding: N(0, 1)
        "emb": jax.random.normal(ks[0], (vocab_size, embedding_size), jnp.float32),
        # nn.LSTM weight_ih_l0 is (4H, E) with gate-row order (i, f, g, o);
        # stored here pre-transposed & column-fused as (E, 4H).
        "w_ih": jax.random.uniform(ks[1], (embedding_size, G),
                                   jnp.float32, -bound, bound),
        "w_hh": jax.random.uniform(ks[2], (hidden_size, G),
                                   jnp.float32, -bound, bound),
        # combined b_ih + b_hh, fused over gates
        "b": (jax.random.uniform(ks[3], (1, G), jnp.float32, -bound, bound)
              + jax.random.uniform(ks[4], (1, G), jnp.float32, -bound, bound)),
        # nn.Linear(hidden_size, num_factory)
        "w_fc": jax.random.uniform(ks[5], (hidden_size, num_factory),
                                   jnp.float32, -bound, bound),
        "b_fc": jax.random.uniform(ks[6], (1, num_factory),
                                   jnp.float32, -bound, bound),
    }
    return params


if __name__ == "__main__":
    vocab_size, embedding_size, hidden_size, num_factory = 50, 16, 32, 8
    batch, seq = 8, 8   # batch=8 keeps all sublane dims 8-aligned

    key = jax.random.PRNGKey(0)
    k_param, k_tok = jax.random.split(key)
    params = init_params(k_param, vocab_size, embedding_size, hidden_size,
                         num_factory)
    token_ids = jax.random.randint(k_tok, (batch, seq), 0, vocab_size, jnp.int32)

    out = emb_forward(token_ids, params)
    out = jax.block_until_ready(out)

    ref = ref_forward(token_ids, params)
    assert out.shape == (batch, num_factory)
    np.testing.assert_allclose(np.asarray(out), np.asarray(ref),
                               rtol=1e-4, atol=1e-4)

    print("KERNEL_OK")
</pallas_src>

<mosaic_0001>
module attributes {stable_mosaic.version = 11 : i64} {
  func.func @emb_lstm_fc_kernel(%arg0: memref<64x1xi32, #tpu.memory_space<vmem>>, %arg1: memref<56x128xf32, #tpu.memory_space<vmem>>, %arg2: memref<32x128xf32, #tpu.memory_space<vmem>>, %arg3: memref<32x128xf32, #tpu.memory_space<vmem>>, %arg4: memref<1x128xf32, #tpu.memory_space<vmem>>, %arg5: memref<8x128xf32, #tpu.memory_space<vmem>>) attributes {dimension_semantics = [], scalar_prefetch = 0 : i64, scratch_operands = 0 : i64, tpu.core_type = #tpu.core_type<tc>} {
    %c0 = arith.constant 0 : index
    %c0_0 = arith.constant 0 : index
    %0 = vector.load %arg0[%c0, %c0_0] : memref<64x1xi32, #tpu.memory_space<vmem>>, vector<64x1xi32>
    %1 = tpu.iota {dimensions = array<i32: 1>} : vector<64x56xi32>
    %2 = vector.broadcast %0 : vector<64x1xi32> to vector<64x56xi32>
    %3 = arith.cmpi eq, %2, %1 : vector<64x56xi32>
    %cst = arith.constant 1.000000e+00 : f32
    %cst_1 = arith.constant 0.000000e+00 : f32
    %4 = vector.broadcast %cst : f32 to vector<64x56xf32>
    %5 = vector.broadcast %cst_1 : f32 to vector<64x56xf32>
    %6 = arith.select %3, %4, %5 : vector<64x56xi1>, vector<64x56xf32>
    %c0_2 = arith.constant 0 : index
    %c0_3 = arith.constant 0 : index
    %7 = vector.load %arg1[%c0_2, %c0_3] : memref<56x128xf32, #tpu.memory_space<vmem>>, vector<56x128xf32>
    %cst_4 = arith.constant dense<0.000000e+00> : vector<64x128xf32>
    %8 = tpu.matmul %6, %7, %cst_4 {dimension_numbers = #tpu.dot_dimension_numbers<[1], [0], [0], [1], [0, 0, 1, 1], [], []>} : vector<64x56xf32>, vector<56x128xf32>, vector<64x128xf32> -> vector<64x128xf32>
    %c0_5 = arith.constant 0 : index
    %c0_6 = arith.constant 0 : index
    %9 = vector.load %arg2[%c0_5, %c0_6] : memref<32x128xf32, #tpu.memory_space<vmem>>, vector<32x128xf32>
    %cst_7 = arith.constant 0.000000e+00 : f32
    %10 = vector.broadcast %cst_7 : f32 to vector<8x32xf32>
    %cst_8 = arith.constant 0.000000e+00 : f32
    %11 = vector.broadcast %cst_8 : f32 to vector<8x32xf32>
    %12 = vector.extract_strided_slice %8 {offsets = [0, 0], sizes = [8, 128], strides = [1, 1]} : vector<64x128xf32> to vector<8x128xf32>
    %cst_9 = arith.constant dense<0.000000e+00> : vector<8x128xf32>
    %13 = tpu.matmul %10, %9, %cst_9 {dimension_numbers = #tpu.dot_dimension_numbers<[1], [0], [0], [1], [0, 0, 1, 1], [], []>} : vector<8x32xf32>, vector<32x128xf32>, vector<8x128xf32> -> vector<8x128xf32>
    %14 = arith.addf %12, %13 : vector<8x128xf32>
    %15 = arith.negf %14 : vector<8x128xf32>
    %16 = math.exp %15 : vector<8x128xf32>
    %cst_10 = arith.constant 1.000000e+00 : f32
    %17 = vector.broadcast %cst_10 : f32 to vector<8x128xf32>
    %18 = arith.addf %17, %16 : vector<8x128xf32>
    %19 = arith.divf %17, %18 : vector<8x128xf32>
    %20 = vector.extract_strided_slice %19 {offsets = [0, 0], sizes = [8, 32], strides = [1, 1]} : vector<8x128xf32> to vector<8x32xf32>
    %21 = vector.extract_strided_slice %19 {offsets = [0, 32], sizes = [8, 32], strides = [1, 1]} : vector<8x128xf32> to vector<8x32xf32>
    %22 = vector.extract_strided_slice %19 {offsets = [0, 64], sizes = [8, 32], strides = [1, 1]} : vector<8x128xf32> to vector<8x32xf32>
    %cst_11 = arith.constant 2.000000e+00 : f32
    %23 = vector.broadcast %cst_11 : f32 to vector<8x32xf32>
    %24 = arith.mulf %23, %22 : vector<8x32xf32>
    %cst_12 = arith.constant 1.000000e+00 : f32
    %25 = vector.broadcast %cst_12 : f32 to vector<8x32xf32>
    %26 = arith.subf %24, %25 : vector<8x32xf32>
    %27 = vector.extract_strided_slice %19 {offsets = [0, 96], sizes = [8, 32], strides = [1, 1]} : vector<8x128xf32> to vector<8x32xf32>
    %28 = arith.mulf %21, %11 : vector<8x32xf32>
    %29 = arith.mulf %20, %26 : vector<8x32xf32>
    %30 = arith.addf %28, %29 : vector<8x32xf32>
    %31 = math.tanh %30 : vector<8x32xf32>
    %32 = arith.mulf %27, %31 : vector<8x32xf32>
    %33 = vector.extract_strided_slice %8 {offsets = [8, 0], sizes = [8, 128], strides = [1, 1]} : vector<64x128xf32> to vector<8x128xf32>
    %cst_13 = arith.constant dense<0.000000e+00> : vector<8x128xf32>
    %34 = tpu.matmul %32, %9, %cst_13 {dimension_numbers = #tpu.dot_dimension_numbers<[1], [0], [0], [1], [0, 0, 1, 1], [], []>} : vector<8x32xf32>, vector<32x128xf32>, vector<8x128xf32> -> vector<8x128xf32>
    %35 = arith.addf %33, %34 : vector<8x128xf32>
    %36 = arith.negf %35 : vector<8x128xf32>
    %37 = math.exp %36 : vector<8x128xf32>
    %cst_14 = arith.constant 1.000000e+00 : f32
    %38 = vector.broadcast %cst_14 : f32 to vector<8x128xf32>
    %39 = arith.addf %38, %37 : vector<8x128xf32>
    %40 = arith.divf %38, %39 : vector<8x128xf32>
    %41 = vector.extract_strided_slice %40 {offsets = [0, 0], sizes = [8, 32], strides = [1, 1]} : vector<8x128xf32> to vector<8x32xf32>
    %42 = vector.extract_strided_slice %40 {offsets = [0, 32], sizes = [8, 32], strides = [1, 1]} : vector<8x128xf32> to vector<8x32xf32>
    %43 = vector.extract_strided_slice %40 {offsets = [0, 64], sizes = [8, 32], strides = [1, 1]} : vector<8x128xf32> to vector<8x32xf32>
    %cst_15 = arith.constant 2.000000e+00 : f32
    %44 = vector.broadcast %cst_15 : f32 to vector<8x32xf32>
    %45 = arith.mulf %44, %43 : vector<8x32xf32>
    %cst_16 = arith.constant 1.000000e+00 : f32
    %46 = vector.broadcast %cst_16 : f32 to vector<8x32xf32>
    %47 = arith.subf %45, %46 : vector<8x32xf32>
    %48 = vector.extract_strided_slice %40 {offsets = [0, 96], sizes = [8, 32], strides = [1, 1]} : vector<8x128xf32> to vector<8x32xf32>
    %49 = arith.mulf %42, %30 : vector<8x32xf32>
    %50 = arith.mulf %41, %47 : vector<8x32xf32>
    %51 = arith.addf %49, %50 : vector<8x32xf32>
    %52 = math.tanh %51 : vector<8x32xf32>
    %53 = arith.mulf %48, %52 : vector<8x32xf32>
    %54 = vector.extract_strided_slice %8 {offsets = [16, 0], sizes = [8, 128], strides = [1, 1]} : vector<64x128xf32> to vector<8x128xf32>
    %cst_17 = arith.constant dense<0.000000e+00> : vector<8x128xf32>
    %55 = tpu.matmul %53, %9, %cst_17 {dimension_numbers = #tpu.dot_dimension_numbers<[1], [0], [0], [1], [0, 0, 1, 1], [], []>} : vector<8x32xf32>, vector<32x128xf32>, vector<8x128xf32> -> vector<8x128xf32>
    %56 = arith.addf %54, %55 : vector<8x128xf32>
    %57 = arith.negf %56 : vector<8x128xf32>
    %58 = math.exp %57 : vector<8x128xf32>
    %cst_18 = arith.constant 1.000000e+00 : f32
    %59 = vector.broadcast %cst_18 : f32 to vector<8x128xf32>
    %60 = arith.addf %59, %58 : vector<8x128xf32>
    %61 = arith.divf %59, %60 : vector<8x128xf32>
    %62 = vector.extract_strided_slice %61 {offsets = [0, 0], sizes = [8, 32], strides = [1, 1]} : vector<8x128xf32> to vector<8x32xf32>
    %63 = vector.extract_strided_slice %61 {offsets = [0, 32], sizes = [8, 32], strides = [1, 1]} : vector<8x128xf32> to vector<8x32xf32>
    %64 = vector.extract_strided_slice %61 {offsets = [0, 64], sizes = [8, 32], strides = [1, 1]} : vector<8x128xf32> to vector<8x32xf32>
    %cst_19 = arith.constant 2.000000e+00 : f32
    %65 = vector.broadcast %cst_19 : f32 to vector<8x32xf32>
    %66 = arith.mulf %65, %64 : vector<8x32xf32>
    %cst_20 = arith.constant 1.000000e+00 : f32
    %67 = vector.broadcast %cst_20 : f32 to vector<8x32xf32>
    %68 = arith.subf %66, %67 : vector<8x32xf32>
    %69 = vector.extract_strided_slice %61 {offsets = [0, 96], sizes = [8, 32], strides = [1, 1]} : vector<8x128xf32> to vector<8x32xf32>
    %70 = arith.mulf %63, %51 : vector<8x32xf32>
    %71 = arith.mulf %62, %68 : vector<8x32xf32>
    %72 = arith.addf %70, %71 : vector<8x32xf32>
    %73 = math.tanh %72 : vector<8x32xf32>
    %74 = arith.mulf %69, %73 : vector<8x32xf32>
    %75 = vector.extract_strided_slice %8 {offsets = [24, 0], sizes = [8, 128], strides = [1, 1]} : vector<64x128xf32> to vector<8x128xf32>
    %cst_21 = arith.constant dense<0.000000e+00> : vector<8x128xf32>
    %76 = tpu.matmul %74, %9, %cst_21 {dimension_numbers = #tpu.dot_dimension_numbers<[1], [0], [0], [1], [0, 0, 1, 1], [], []>} : vector<8x32xf32>, vector<32x128xf32>, vector<8x128xf32> -> vector<8x128xf32>
    %77 = arith.addf %75, %76 : vector<8x128xf32>
    %78 = arith.negf %77 : vector<8x128xf32>
    %79 = math.exp %78 : vector<8x128xf32>
    %cst_22 = arith.constant 1.000000e+00 : f32
    %80 = vector.broadcast %cst_22 : f32 to vector<8x128xf32>
    %81 = arith.addf %80, %79 : vector<8x128xf32>
    %82 = arith.divf %80, %81 : vector<8x128xf32>
    %83 = vector.extract_strided_slice %82 {offsets = [0, 0], sizes = [8, 32], strides = [1, 1]} : vector<8x128xf32> to vector<8x32xf32>
    %84 = vector.extract_strided_slice %82 {offsets = [0, 32], sizes = [8, 32], strides = [1, 1]} : vector<8x128xf32> to vector<8x32xf32>
    %85 = vector.extract_strided_slice %82 {offsets = [0, 64], sizes = [8, 32], strides = [1, 1]} : vector<8x128xf32> to vector<8x32xf32>
    %cst_23 = arith.constant 2.000000e+00 : f32
    %86 = vector.broadcast %cst_23 : f32 to vector<8x32xf32>
    %87 = arith.mulf %86, %85 : vector<8x32xf32>
    %cst_24 = arith.constant 1.000000e+00 : f32
    %88 = vector.broadcast %cst_24 : f32 to vector<8x32xf32>
    %89 = arith.subf %87, %88 : vector<8x32xf32>
    %90 = vector.extract_strided_slice %82 {offsets = [0, 96], sizes = [8, 32], strides = [1, 1]} : vector<8x128xf32> to vector<8x32xf32>
    %91 = arith.mulf %84, %72 : vector<8x32xf32>
    %92 = arith.mulf %83, %89 : vector<8x32xf32>
    %93 = arith.addf %91, %92 : vector<8x32xf32>
    %94 = math.tanh %93 : vector<8x32xf32>
    %95 = arith.mulf %90, %94 : vector<8x32xf32>
    %96 = vector.extract_strided_slice %8 {offsets = [32, 0], sizes = [8, 128], strides = [1, 1]} : vector<64x128xf32> to vector<8x128xf32>
    %cst_25 = arith.constant dense<0.000000e+00> : vector<8x128xf32>
    %97 = tpu.matmul %95, %9, %cst_25 {dimension_numbers = #tpu.dot_dimension_numbers<[1], [0], [0], [1], [0, 0, 1, 1], [], []>} : vector<8x32xf32>, vector<32x128xf32>, vector<8x128xf32> -> vector<8x128xf32>
    %98 = arith.addf %96, %97 : vector<8x128xf32>
    %99 = arith.negf %98 : vector<8x128xf32>
    %100 = math.exp %99 : vector<8x128xf32>
    %cst_26 = arith.constant 1.000000e+00 : f32
    %101 = vector.broadcast %cst_26 : f32 to vector<8x128xf32>
    %102 = arith.addf %101, %100 : vector<8x128xf32>
    %103 = arith.divf %101, %102 : vector<8x128xf32>
    %104 = vector.extract_strided_slice %103 {offsets = [0, 0], sizes = [8, 32], strides = [1, 1]} : vector<8x128xf32> to vector<8x32xf32>
    %105 = vector.extract_strided_slice %103 {offsets = [0, 32], sizes = [8, 32], strides = [1, 1]} : vector<8x128xf32> to vector<8x32xf32>
    %106 = vector.extract_strided_slice %103 {offsets = [0, 64], sizes = [8, 32], strides = [1, 1]} : vector<8x128xf32> to vector<8x32xf32>
    %cst_27 = arith.constant 2.000000e+00 : f32
    %107 = vector.broadcast %cst_27 : f32 to vector<8x32xf32>
    %108 = arith.mulf %107, %106 : vector<8x32xf32>
    %cst_28 = arith.constant 1.000000e+00 : f32
    %109 = vector.broadcast %cst_28 : f32 to vector<8x32xf32>
    %110 = arith.subf %108, %109 : vector<8x32xf32>
    %111 = vector.extract_strided_slice %103 {offsets = [0, 96], sizes = [8, 32], strides = [1, 1]} : vector<8x128xf32> to vector<8x32xf32>
    %112 = arith.mulf %105, %93 : vector<8x32xf32>
    %113 = arith.mulf %104, %110 : vector<8x32xf32>
    %114 = arith.addf %112, %113 : vector<8x32xf32>
    %115 = math.tanh %114 : vector<8x32xf32>
    %116 = arith.mulf %111, %115 : vector<8x32xf32>
    %117 = vector.extract_strided_slice %8 {offsets = [40, 0], sizes = [8, 128], strides = [1, 1]} : vector<64x128xf32> to vector<8x128xf32>
    %cst_29 = arith.constant dense<0.000000e+00> : vector<8x128xf32>
    %118 = tpu.matmul %116, %9, %cst_29 {dimension_numbers = #tpu.dot_dimension_numbers<[1], [0], [0], [1], [0, 0, 1, 1], [], []>} : vector<8x32xf32>, vector<32x128xf32>, vector<8x128xf32> -> vector<8x128xf32>
    %119 = arith.addf %117, %118 : vector<8x128xf32>
    %120 = arith.negf %119 : vector<8x128xf32>
    %121 = math.exp %120 : vector<8x128xf32>
    %cst_30 = arith.constant 1.000000e+00 : f32
    %122 = vector.broadcast %cst_30 : f32 to vector<8x128xf32>
    %123 = arith.addf %122, %121 : vector<8x128xf32>
    %124 = arith.divf %122, %123 : vector<8x128xf32>
    %125 = vector.extract_strided_slice %124 {offsets = [0, 0], sizes = [8, 32], strides = [1, 1]} : vector<8x128xf32> to vector<8x32xf32>
    %126 = vector.extract_strided_slice %124 {offsets = [0, 32], sizes = [8, 32], strides = [1, 1]} : vector<8x128xf32> to vector<8x32xf32>
    %127 = vector.extract_strided_slice %124 {offsets = [0, 64], sizes = [8, 32], strides = [1, 1]} : vector<8x128xf32> to vector<8x32xf32>
    %cst_31 = arith.constant 2.000000e+00 : f32
    %128 = vector.broadcast %cst_31 : f32 to vector<8x32xf32>
    %129 = arith.mulf %128, %127 : vector<8x32xf32>
    %cst_32 = arith.constant 1.000000e+00 : f32
    %130 = vector.broadcast %cst_32 : f32 to vector<8x32xf32>
    %131 = arith.subf %129, %130 : vector<8x32xf32>
    %132 = vector.extract_strided_slice %124 {offsets = [0, 96], sizes = [8, 32], strides = [1, 1]} : vector<8x128xf32> to vector<8x32xf32>
    %133 = arith.mulf %126, %114 : vector<8x32xf32>
    %134 = arith.mulf %125, %131 : vector<8x32xf32>
    %135 = arith.addf %133, %134 : vector<8x32xf32>
    %136 = math.tanh %135 : vector<8x32xf32>
    %137 = arith.mulf %132, %136 : vector<8x32xf32>
    %138 = vector.extract_strided_slice %8 {offsets = [48, 0], sizes = [8, 128], strides = [1, 1]} : vector<64x128xf32> to vector<8x128xf32>
    %cst_33 = arith.constant dense<0.000000e+00> : vector<8x128xf32>
    %139 = tpu.matmul %137, %9, %cst_33 {dimension_numbers = #tpu.dot_dimension_numbers<[1], [0], [0], [1], [0, 0, 1, 1], [], []>} : vector<8x32xf32>, vector<32x128xf32>, vector<8x128xf32> -> vector<8x128xf32>
    %140 = arith.addf %138, %139 : vector<8x128xf32>
    %141 = arith.negf %140 : vector<8x128xf32>
    %142 = math.exp %141 : vector<8x128xf32>
    %cst_34 = arith.constant 1.000000e+00 : f32
    %143 = vector.broadcast %cst_34 : f32 to vector<8x128xf32>
    %144 = arith.addf %143, %142 : vector<8x128xf32>
    %145 = arith.divf %143, %144 : vector<8x128xf32>
    %146 = vector.extract_strided_slice %145 {offsets = [0, 0], sizes = [8, 32], strides = [1, 1]} : vector<8x128xf32> to vector<8x32xf32>
    %147 = vector.extract_strided_slice %145 {offsets = [0, 32], sizes = [8, 32], strides = [1, 1]} : vector<8x128xf32> to vector<8x32xf32>
    %148 = vector.extract_strided_slice %145 {offsets = [0, 64], sizes = [8, 32], strides = [1, 1]} : vector<8x128xf32> to vector<8x32xf32>
    %cst_35 = arith.constant 2.000000e+00 : f32
    %149 = vector.broadcast %cst_35 : f32 to vector<8x32xf32>
    %150 = arith.mulf %149, %148 : vector<8x32xf32>
    %cst_36 = arith.constant 1.000000e+00 : f32
    %151 = vector.broadcast %cst_36 : f32 to vector<8x32xf32>
    %152 = arith.subf %150, %151 : vector<8x32xf32>
    %153 = vector.extract_strided_slice %145 {offsets = [0, 96], sizes = [8, 32], strides = [1, 1]} : vector<8x128xf32> to vector<8x32xf32>
    %154 = arith.mulf %147, %135 : vector<8x32xf32>
    %155 = arith.mulf %146, %152 : vector<8x32xf32>
    %156 = arith.addf %154, %155 : vector<8x32xf32>
    %157 = math.tanh %156 : vector<8x32xf32>
    %158 = arith.mulf %153, %157 : vector<8x32xf32>
    %159 = vector.extract_strided_slice %8 {offsets = [56, 0], sizes = [8, 128], strides = [1, 1]} : vector<64x128xf32> to vector<8x128xf32>
    %cst_37 = arith.constant dense<0.000000e+00> : vector<8x128xf32>
    %160 = tpu.matmul %158, %9, %cst_37 {dimension_numbers = #tpu.dot_dimension_numbers<[1], [0], [0], [1], [0, 0, 1, 1], [], []>} : vector<8x32xf32>, vector<32x128xf32>, vector<8x128xf32> -> vector<8x128xf32>
    %161 = arith.addf %159, %160 : vector<8x128xf32>
    %162 = arith.negf %161 : vector<8x128xf32>
    %163 = math.exp %162 : vector<8x128xf32>
    %cst_38 = arith.constant 1.000000e+00 : f32
    %164 = vector.broadcast %cst_38 : f32 to vector<8x128xf32>
    %165 = arith.addf %164, %163 : vector<8x128xf32>
    %166 = arith.divf %164, %165 : vector<8x128xf32>
    %167 = vector.extract_strided_slice %166 {offsets = [0, 0], sizes = [8, 32], strides = [1, 1]} : vector<8x128xf32> to vector<8x32xf32>
    %168 = vector.extract_strided_slice %166 {offsets = [0, 32], sizes = [8, 32], strides = [1, 1]} : vector<8x128xf32> to vector<8x32xf32>
    %169 = vector.extract_strided_slice %166 {offsets = [0, 64], sizes = [8, 32], strides = [1, 1]} : vector<8x128xf32> to vector<8x32xf32>
    %cst_39 = arith.constant 2.000000e+00 : f32
    %170 = vector.broadcast %cst_39 : f32 to vector<8x32xf32>
    %171 = arith.mulf %170, %169 : vector<8x32xf32>
    %cst_40 = arith.constant 1.000000e+00 : f32
    %172 = vector.broadcast %cst_40 : f32 to vector<8x32xf32>
    %173 = arith.subf %171, %172 : vector<8x32xf32>
    %174 = vector.extract_strided_slice %166 {offsets = [0, 96], sizes = [8, 32], strides = [1, 1]} : vector<8x128xf32> to vector<8x32xf32>
    %175 = arith.mulf %168, %156 : vector<8x32xf32>
    %176 = arith.mulf %167, %173 : vector<8x32xf32>
    %177 = arith.addf %175, %176 : vector<8x32xf32>
    %178 = math.tanh %177 : vector<8x32xf32>
    %179 = arith.mulf %174, %178 : vector<8x32xf32>
    %c0_41 = arith.constant 0 : index
    %c0_42 = arith.constant 0 : index
    %180 = vector.load %arg3[%c0_41, %c0_42] : memref<32x128xf32, #tpu.memory_space<vmem>>, vector<32x128xf32>
    %cst_43 = arith.constant dense<0.000000e+00> : vector<8x128xf32>
    %181 = tpu.matmul %179, %180, %cst_43 {dimension_numbers = #tpu.dot_dimension_numbers<[1], [0], [0], [1], [0, 0, 1, 1], [], []>} : vector<8x32xf32>, vector<32x128xf32>, vector<8x128xf32> -> vector<8x128xf32>
    %c0_44 = arith.constant 0 : index
    %c0_45 = arith.constant 0 : index
    %182 = vector.load %arg4[%c0_44, %c0_45] : memref<1x128xf32, #tpu.memory_space<vmem>>, vector<1x128xf32>
    %183 = vector.broadcast %182 : vector<1x128xf32> to vector<8x128xf32>
    %184 = arith.addf %181, %183 : vector<8x128xf32>
    %c0_46 = arith.constant 0 : index
    %c0_47 = arith.constant 0 : index
    %185 = vector.load %arg5[%c0_46, %c0_47] : memref<8x128xf32, #tpu.memory_space<vmem>>, vector<8x128xf32>
    tpu.vector_store %arg5[%c0_46, %c0_47], %184 {strides = array<i32>} : memref<8x128xf32, #tpu.memory_space<vmem>>, vector<8x128xf32>,
    return
  }
}

</mosaic_0001>

<bundles_post_ra>
// kernel: tpu_custom_call.1
= control target key start
LH: loop header
LB: loop body
LE: loop exit
PB: predicated region body
PF: predicated region fallthrough
CT: control target
= control target key end

     0   :  { %10 = vsyncpa [#allocation3], 0  ;;  %s1764_s0 = inlined_call_operand.vmem [shape: s32[64,1], index: 0, kind: input, shape index: {}]   ;;  %s1765_s1 = inlined_call_operand.vmem [shape: f32[56,128], index: 1, kind: input, shape index: {}]   ;;  %s1766_s2 = inlined_call_operand.hbm [shape: f32[32,128], index: 2, kind: input, shape index: {}]   ;;  %s1767_s3 = inlined_call_operand.hbm [shape: f32[32,128], index: 3, kind: input, shape index: {}]   ;;  %s1768_s4 = inlined_call_operand.vmem [shape: f32[1,128], index: 4, kind: input, shape index: {}]   ;;  %s1769_s5 = inlined_call_operand.hbm [shape: f32[8,128], index: 5, kind: output, shape index: {}]  }
   0x1   :  { %11 = vsyncpa [#allocation6], 0 }
   0x2   :  { %12 = vsyncpa [#allocation4], 0  ;;  %s1494_s18 = smov [#allocation2]  }
   0x3   :  { %s22_s19 = sshll.u32 %s1494_s18, 4  ;;  %s23_s19 = int_to_ptr.vmem [resolvable:$true] %s22_s19 }
   0x4   :  { %s1436_s20 = scalar_lea.vmem %s23_s19, 512  ;;  %p1441_p1 = scmp.lt.s32.totalorder %s23_s19, %s23_s19 }
   0x5   :  { %p1437_p0 = scmp.ne.s32.totalorder %s23_s19, %s1436_s20  ;;  %p1442_p2 = scmp.lt.s32.totalorder %s1436_s20, %s1436_s20 }
   0x7   :  { %p1443_p3 = por %p1442_p2, %p1441_p1 }
   0x9   :  { %p1444_p4 = pnand %p1443_p3, %p1437_p0 }
   0xb   :  { %1447 = shalt.err (!%p1444_p4)
}
   0xc   :  { %s1495_s21 = smov 128   ;;  %s1496_s22 = smov 8  }
   0xd   :  { %28 = dma.hbm_to_vmem [thread:$0]  %s1766_s2, 512, %s23_s19, [#allocation3], %s1495_s21, %s1495_s21, %s1496_s22  }
   0xe   :  { %s1497_s25 = smov [#allocation5]  }
   0xf   :  { %s34_s26 = sshll.u32 %s1497_s25, 4  ;;  %s35_s26 = int_to_ptr.vmem [resolvable:$true] %s34_s26 }
  0x10   :  { %s1456_s27 = scalar_lea.vmem %s35_s26, 512  ;;  %p1461_p6 = scmp.lt.s32.totalorder %s35_s26, %s35_s26 }
  0x11   :  { %p1457_p5 = scmp.ne.s32.totalorder %s35_s26, %s1456_s27  ;;  %p1462_p7 = scmp.lt.s32.totalorder %s1456_s27, %s1456_s27 }
  0x13   :  { %p1463_p8 = por %p1462_p7, %p1461_p6 }
  0x15   :  { %p1464_p9 = pnand %p1463_p8, %p1457_p5 }
  0x17   :  { %1467 = shalt.err (!%p1464_p9)
}
  0x18   :  { %40 = dma.hbm_to_vmem [thread:$0]  %s1767_s3, 512, %s35_s26, [#allocation6], %s1495_s21, %s1495_s21, %s1496_s22  }
  0x19   :  { %1488 = dma.done.wait [#allocation3], 512  }
  0x1a   :  { %1489 = vsyncadd [#allocation3], 4294966784 }
  0x1b   :  { %1490 = dma.done.wait [#allocation6], 512  }
  0x1c   :  { %1491 = vsyncadd [#allocation6], 4294966784  ;;  %v1498_v0 = vmov 0   ;;  %v1499_v1 = vmov 0.0   ;;  %v49_v2 = vld [vmem:[%s1764_s0] sm:$0xff]  ;;  %v105_v3 = vld [vmem:[%s1765_s1 + $0x30] sm:$0xff]  ;;  %v57_v15 = vlaneseq }
  0x1d   :  { %1378 = vset.pattern.permute.xlu0 %v1498_v0  ;;  %1269 = vmatprep.subr.mxu1 %v1499_v1  ;;  %v104_v4 = vld [vmem:[%s1765_s1 + $0x28] sm:$0xff]  ;;  %v103_v6 = vld [vmem:[%s1765_s1 + $0x20] sm:$0xff]  ;;  %v1556_v7 = vld [vmem:[#allocation2 + $0x18] sm:$0xff]  ;;  %vm1500_vm0 = vmmov 0   ;;  %vm106_vm1 = vcmask 457728   ;;  %s1502_s21 = smov 32  }
  0x1e   :  { %1379 = vset.pattern.permute.xlu1 %v1498_v0  ;;  %60 = vperm.xlu0 %1378, %v49_v2   ;;  %v50_v5 = vld [vmem:[%s1764_s0 + $0x8] sm:$0xff]  ;;  %v1561_v8 = vld [vmem:[#allocation2 + $0x10] sm:$0xff]  ;;  %v102_v9 = vld [vmem:[%s1765_s1 + $0x18] sm:$0xff]  ;;  %v1598_v16 = vand.u32 127, %v57_v15  ;;  %vm240_vm4 = vcmask 261120   ;;  %s1503_s8 = smov [#allocation7]  }
  0x1f   :  { %1243 = vmatprep.subr.mxu0 %v105_v3  ;;  %1277 = vmatprep.mubr.msk.f32.mxu1 %vm1500_vm0, %v1499_v1  ;;  %v1567_v10 = vld [vmem:[#allocation2 + $0x8] sm:$0xff]  ;;  %v101_v11 = vld [vmem:[%s1765_s1 + $0x10] sm:$0xff]  ;;  %v1574_v12 = vld [vmem:[#allocation2] sm:$0xff]  ;;  %s1140_s9 = sshll.u32 %s1503_s8, 4  ;;  %s1141_s9 = int_to_ptr.vmem [resolvable:$true] %s1140_s9 }
  0x20   :  { %1244 = vmatpush3.msra.mxu0 %v105_v3  ;;  %1270 = vmatpush3.msra.mxu1 %v1556_v7  ;;  %v100_v13 = vld [vmem:[%s1765_s1 + $0x8] sm:$0xff]  ;;  %v99_v14 = vld [vmem:[%s1765_s1] sm:$0xff]  ;;  %s1501_s1 = smov 64   ;;  %v51_v52 = vld [vmem:[%s1764_s0 + $0x10] sm:$0xff]  ;;  %s1468_s10 = scalar_lea.vmem %s1141_s9, 128 }
  0x21   :  { %1245 = vmatprep.subr.mxu0 %v104_v4  ;;  %1271 = vmatprep.subr.mxu1 %v1499_v1  ;;  %v52_v59 = vld [vmem:[%s1764_s0 + $0x18] sm:$0xff]  ;;  %p1469_p10 = scmp.ne.s32.totalorder %s1141_s9, %s1468_s10  ;;  %p1473_p11 = scmp.lt.s32.totalorder %s1141_s9, %s1141_s9 }
  0x22   :  { %1246 = vmatpush3.msra.mxu0 %v104_v4  ;;  %63 = vperm.xlu0 %1378, %v50_v5   ;;  %p1474_p12 = scmp.lt.s32.totalorder %s1468_s10, %s1468_s10 }
  0x23   :  { %1247 = vmatprep.subr.mxu0 %v103_v6  ;;  %1272 = vmatpush3.msra.mxu1 %v1561_v8 }
  0x24   :  { %1248 = vmatpush3.msra.mxu0 %v103_v6  ;;  %1273 = vmatprep.subr.mxu1 %v1499_v1  ;;  %p1475_p13 = por %p1474_p12, %p1473_p11 }
  0x25   :  { %1249 = vmatprep.subr.mxu0 %v102_v9  ;;  %1274 = vmatpush3.msra.mxu1 %v1567_v10 }
  0x26   :  { %1250 = vmatpush3.msra.mxu0 %v102_v9  ;;  %1275 = vmatprep.subr.mxu1 %v1499_v1  ;;  %p1476_p0 = pnand %p1475_p13, %p1469_p10 }
  0x27   :  { %1251 = vmatprep.subr.mxu0 %v101_v11  ;;  %1276 = vmatpush3.msra.mxu1 %v1574_v12 }
  0x28   :  { %1252 = vmatpush3.msra.mxu0 %v101_v11  ;;  %1278 = vmatmul.mubr.f32.vlgmr.msra.gmra.mxu1 %v1499_v1 }
  0x29   :  { %1253 = vmatprep.subr.mxu0 %v100_v13  ;;  %1280 = vmatprep.subr.mxu1 %v1499_v1 }
  0x2a   :  { %1254 = vmatpush3.msra.mxu0 %v100_v13  ;;  %1281 = vmatpush3.msra.mxu1 %v1556_v7 }
  0x2b   :  { %1255 = vmatprep.subr.mxu0 %v99_v14  ;;  %1282 = vmatprep.subr.mxu1 %v1499_v1 }
  0x2c   :  { %1256 = vmatpush3.msra.mxu0 %v99_v14  ;;  %1283 = vmatpush3.msra.mxu1 %v1561_v8 }
  0x2d   :  { %1288 = vmatprep.mubr.msk.f32.mxu1 %vm1500_vm0, %v1499_v1  ;;  %1284 = vmatprep.subr.mxu1 %v1499_v1 }
  0x2e   :  { %1302 = vmatprep.subr.mxu0 %v1499_v1  ;;  %1285 = vmatpush3.msra.mxu1 %v1567_v10 }
  0x2f   :  { %1286 = vmatprep.subr.mxu1 %v1499_v1 }
  0x30   :  { %1287 = vmatpush3.msra.mxu1 %v1574_v12 }
  0x31   :  { %1291 = vmatprep.subr.mxu1 %v1499_v1 }
  0x99   :  { %v61_v17 = vpop.permute.xlu0 %60 }
  0x9a   :  { %vm83_vm2 = vcmp.eq.s32.totalorder %v61_v17, %v1598_v16 }
  0x9b   :  { %v91_v18 = vsel %vm83_vm2, 1.0, %v1499_v1 }
  0x9c   :  { %1257 = vmatprep.mubr.msk.f32.mxu0 %vm106_vm1, %v91_v18 }
  0x9d   :  { %v64_v19 = vpop.permute.xlu0 %63 }
  0x9e   :  { %vm84_vm3 = vcmp.eq.s32.totalorder %v64_v19, %v1598_v16 }
  0x9f   :  { %v92_v20 = vsel %vm84_vm3, 1.0, %v1499_v1 }
  0xa0   :  { %1258 = vmatmul.mubr.msk.f32.vlgmr.msra.gmra.mxu0 %vm106_vm1, %v92_v20  ;;  %v53_v20 = vld [vmem:[%s1764_s0 + $0x20] sm:$0xff] }
  0xa1   :  { %1303 = vmatpush3.msra.mxu0 %v1556_v7 }
  0xa2   :  { %1304 = vmatprep.subr.mxu0 %v1499_v1 }
  0xa3   :  { %1305 = vmatpush3.msra.mxu0 %v1561_v8 }
  0xa4   :  { %1306 = vmatprep.subr.mxu0 %v1499_v1 }
  0xa5   :  { %1307 = vmatpush3.msra.mxu0 %v1567_v10 }
  0xa6   :  { %1308 = vmatprep.subr.mxu0 %v1499_v1 }
  0xa7   :  { %1309 = vmatpush3.msra.mxu0 %v1574_v12 }
  0xa8   :  { %1324 = vmatprep.subr.mxu0 %v1499_v1 }
  0xe8   :  { %v310_v21 = vpop.f32.mrf.mxu1 }
  0xea   :  { %v1279_v22 = vpop.f32.mrf.mxu1 }
 0x160   :  { %v1259_v23 = vpop.f32.mrf.mxu0 }
 0x162   :  { %v197_v24 = vpop.f32.mrf.mxu0 }
 0x163   :  { %v314_v25 = vadd.f32 %v310_v21, %v197_v24  ;;  %v55_v21 = vld [vmem:[%s1764_s0 + $0x30] sm:$0xff] }
 0x165   :  { %v1158_v26 = vmul.f32 -1.442695, %v314_v25 }
 0x167   :  { %1380 = vpow2.f32 %v1158_v26 }
 0x174   :  { %v1381_v27 = vpop.eup %1380 }
 0x175   :  { %v318_v28 = vadd.f32 1.0, %v1381_v27 }
 0x177   :  { %1382 = vrcp.f32 %v318_v28  ;;  %v54_v28 = vld [vmem:[%s1764_s0 + $0x28] sm:$0xff] }
 0x184   :  { %v1383_v29 = vpop.eup %1382 }
 0x185   :  { %v321_v30 = vmul.f32 2.0, %v1383_v29  ;;  %v323_v34 = vmul.f32 0.0, %v1383_v29 }
 0x187   :  { %v1159_v31 = vadd.f32 -1.0, %v321_v30 }
 0x189   :  { %325 = vrot.lane.b32.xlu1 %v1159_v31, %s1501_s1 }
 0x1fb   :  { %v326_v32 = vpop.permute.xlu1 %325 }
 0x1fc   :  { %v328_v33 = vmul.f32 %v1383_v29, %v326_v32 }
 0x1fe   :  { %330 = vrot.lane.b32.xlu1 %v328_v33, %s1502_s21 }
 0x270   :  { %v331_v35 = vpop.permute.xlu1 %330 }
 0x271   :  { %v333_v36 = vadd.f32 %v331_v35, %v323_v34 }
 0x273   :  { %1384 = vtanh.f32 %v333_v36 }
 0x280   :  { %v1385_v37 = vpop.eup %1384 }
 0x281   :  { %336 = vrot.lane.b32.xlu0 %v1385_v37, %s1501_s1 }
 0x2f3   :  { %v337_v38 = vpop.permute.xlu0 %336 }
 0x2f4   :  { %v339_v39 = vmul.f32 %v1383_v29, %v337_v38  ;;  %v56_v29 = vld [vmem:[%s1764_s0 + $0x38] sm:$0xff] }
 0x2f6   :  { %341 = vrot.lane.b32.xlu1 %v339_v39, %s1502_s21 }
 0x368   :  { %v342_v40 = vpop.permute.xlu1 %341 }
 0x369   :  { %1289 = vmatmul.mubr.msk.f32.vlgmr.msra.gmra.mxu1 %vm240_vm4, %v342_v40 }
 0x36a   :  { %1292 = vmatpush3.msra.mxu1 %v1556_v7  ;;  %1299 = vmatprep.mubr.msk.f32.mxu1 %vm1500_vm0, %v1499_v1 }
 0x36b   :  { %1293 = vmatprep.subr.mxu1 %v1499_v1 }
 0x36c   :  { %1294 = vmatpush3.msra.mxu1 %v1561_v8 }
 0x36d   :  { %1295 = vmatprep.subr.mxu1 %v1499_v1 }
 0x36e   :  { %1296 = vmatpush3.msra.mxu1 %v1567_v10 }
 0x36f   :  { %1297 = vmatprep.subr.mxu1 %v1499_v1 }
 0x370   :  { %1298 = vmatpush3.msra.mxu1 %v1574_v12 }
 0x371   :  { %1313 = vmatprep.subr.mxu1 %v1499_v1 }
 0x429   :  { %v411_v41 = vpop.f32.mrf.mxu1 }
 0x42a   :  { %v415_v42 = vadd.f32 %v1259_v23, %v411_v41 }
 0x42b   :  { %v1290_v43 = vpop.f32.mrf.mxu1 }
 0x42c   :  { %v1161_v44 = vmul.f32 -1.442695, %v415_v42 }
 0x42e   :  { %1386 = vpow2.f32 %v1161_v44 }
 0x43b   :  { %v1387_v45 = vpop.eup %1386 }
 0x43c   :  { %v419_v46 = vadd.f32 1.0, %v1387_v45 }
 0x43e   :  { %1388 = vrcp.f32 %v419_v46 }
 0x44b   :  { %v1389_v47 = vpop.eup %1388 }
 0x44c   :  { %v422_v48 = vmul.f32 2.0, %v1389_v47  ;;  %v424_v53 = vmul.f32 %v1389_v47, %v333_v36 }
 0x44e   :  { %v1162_v49 = vadd.f32 -1.0, %v422_v48 }
 0x450   :  { %426 = vrot.lane.b32.xlu0 %v1162_v49, %s1501_s1 }
 0x4c2   :  { %v427_v50 = vpop.permute.xlu0 %426 }
 0x4c3   :  { %v429_v51 = vmul.f32 %v1389_v47, %v427_v50 }
 0x4c5   :  { %431 = vrot.lane.b32.xlu1 %v429_v51, %s1502_s21 }
 0x4c9   :  { %66 = vperm.xlu1 %1379, %v51_v52  }
 0x537   :  { %v432_v54 = vpop.permute.xlu1 %431 }
 0x538   :  { %v434_v55 = vadd.f32 %v432_v54, %v424_v53 }
 0x53a   :  { %1390 = vtanh.f32 %v434_v55 }
 0x544   :  { %v67_v56 = vpop.permute.xlu1 %66 }
 0x545   :  { %vm85_vm5 = vcmp.eq.s32.totalorder %v67_v56, %v1598_v16 }
 0x546   :  { %v93_v57 = vsel %vm85_vm5, 1.0, %v1499_v1 }
 0x547   :  { %v1391_v58 = vpop.eup %1390  ;;  %1260 = vmatprep.mubr.msk.f32.mxu0 %vm106_vm1, %v93_v57 }
 0x548   :  { %437 = vrot.lane.b32.xlu0 %v1391_v58, %s1501_s1 }
 0x54c   :  { %69 = vperm.xlu0 %1378, %v52_v59  }
 0x5ba   :  { %v438_v60 = vpop.permute.xlu0 %437 }
 0x5bb   :  { %v440_v61 = vmul.f32 %v1389_v47, %v438_v60 }
 0x5bd   :  { %442 = vrot.lane.b32.xlu1 %v440_v61, %s1502_s21 }
 0x5c7   :  { %v70_v62 = vpop.permute.xlu0 %69 }
 0x5c8   :  { %vm86_vm6 = vcmp.eq.s32.totalorder %v70_v62, %v1598_v16 }
 0x5c9   :  { %v94_v63 = vsel %vm86_vm6, 1.0, %v1499_v1 }
 0x5ca   :  { %1261 = vmatmul.mubr.msk.f32.gmra.mxu0 %vm106_vm1, %v94_v63 }
 0x62f   :  { %v443_v0 = vpop.permute.xlu1 %442 }
 0x630   :  { %1300 = vmatmul.mubr.msk.f32.vlgmr.msra.gmra.mxu1 %vm240_vm4, %v443_v0 }
 0x631   :  { %1314 = vmatpush3.msra.mxu1 %v1556_v7  ;;  %1321 = vmatprep.mubr.msk.f32.mxu1 %vm1500_vm0, %v1499_v1 }
 0x632   :  { %1315 = vmatprep.subr.mxu1 %v1499_v1 }
 0x633   :  { %1316 = vmatpush3.msra.mxu1 %v1561_v8 }
 0x634   :  { %1317 = vmatprep.subr.mxu1 %v1499_v1 }
 0x635   :  { %1318 = vmatpush3.msra.mxu1 %v1567_v10 }
 0x636   :  { %1319 = vmatprep.subr.mxu1 %v1499_v1 }
 0x637   :  { %1320 = vmatpush3.msra.mxu1 %v1574_v12 }
 0x638   :  { %1335 = vmatprep.subr.mxu1 %v1499_v1 }
 0x68a   :  { %v1656_v2 = vpop.f32.mrf.mxu0 }
 0x68c   :  { %v207_v3 = vpop.f32.mrf.mxu0 }
 0x6f0   :  { %v512_v4 = vpop.f32.mrf.mxu1 }
 0x6f1   :  { %v516_v5 = vadd.f32 %v512_v4, %v207_v3 }
 0x6f2   :  { %v1301_v6 = vpop.f32.mrf.mxu1 }
 0x6f3   :  { %v1164_v9 = vmul.f32 -1.442695, %v516_v5 }
 0x6f5   :  { %1392 = vpow2.f32 %v1164_v9 }
 0x702   :  { %v1393_v11 = vpop.eup %1392 }
 0x703   :  { %v520_v13 = vadd.f32 1.0, %v1393_v11 }
 0x705   :  { %1394 = vrcp.f32 %v520_v13 }
 0x712   :  { %v1395_v14 = vpop.eup %1394 }
 0x713   :  { %v523_v15 = vmul.f32 2.0, %v1395_v14  ;;  %v525_v22 = vmul.f32 %v1395_v14, %v434_v55 }
 0x715   :  { %v1165_v17 = vadd.f32 -1.0, %v523_v15 }
 0x717   :  { %527 = vrot.lane.b32.xlu0 %v1165_v17, %s1501_s1 }
 0x789   :  { %v528_v18 = vpop.permute.xlu0 %527 }
 0x78a   :  { %v530_v19 = vmul.f32 %v1395_v14, %v528_v18 }
 0x78c   :  { %532 = vrot.lane.b32.xlu1 %v530_v19, %s1502_s21 }
 0x790   :  { %72 = vperm.xlu1 %1379, %v53_v20  }
 0x794   :  { %78 = vperm.xlu1 %1379, %v55_v21  }
 0x7fe   :  { %v533_v23 = vpop.permute.xlu1 %532 }
 0x7ff   :  { %v535_v24 = vadd.f32 %v533_v23, %v525_v22 }
 0x801   :  { %1396 = vtanh.f32 %v535_v24 }
 0x80b   :  { %v73_v25 = vpop.permute.xlu1 %72 }
 0x80c   :  { %vm87_vm7 = vcmp.eq.s32.totalorder %v73_v25, %v1598_v16 }
 0x80d   :  { %v95_v26 = vsel %vm87_vm7, 1.0, %v1499_v1 }
 0x80e   :  { %v1397_v27 = vpop.eup %1396  ;;  %1263 = vmatprep.mubr.msk.f32.mxu0 %vm106_vm1, %v95_v26 }
 0x80f   :  { %538 = vrot.lane.b32.xlu0 %v1397_v27, %s1501_s1  ;;  %v79_v32 = vpop.permute.xlu1 %78 }
 0x810   :  { %vm89_vm8 = vcmp.eq.s32.totalorder %v79_v32, %v1598_v16 }
 0x811   :  { %v97_v35 = vsel %vm89_vm8, 1.0, %v1499_v1 }
 0x813   :  { %75 = vperm.xlu0 %1378, %v54_v28  }
 0x817   :  { %81 = vperm.xlu0 %1378, %v56_v29  }
 0x881   :  { %v539_v30 = vpop.permute.xlu0 %538 }
 0x882   :  { %v541_v31 = vmul.f32 %v1395_v14, %v539_v30 }
 0x884   :  { %543 = vrot.lane.b32.xlu1 %v541_v31, %s1502_s21 }
 0x88e   :  { %v76_v33 = vpop.permute.xlu0 %75 }
 0x88f   :  { %vm88_vm9 = vcmp.eq.s32.totalorder %v76_v33, %v1598_v16 }
 0x890   :  { %v96_v34 = vsel %vm88_vm9, 1.0, %v1499_v1 }
 0x891   :  { %1264 = vmatmul.mubr.msk.f32.gmra.mxu0 %vm106_vm1, %v96_v34 }
 0x892   :  { %v82_v36 = vpop.permute.xlu0 %81  ;;  %1266 = vmatprep.mubr.msk.f32.mxu0 %vm106_vm1, %v97_v35 }
 0x893   :  { %vm90_vm10 = vcmp.eq.s32.totalorder %v82_v36, %v1598_v16 }
 0x894   :  { %v98_v37 = vsel %vm90_vm10, 1.0, %v1499_v1 }
 0x895   :  { %1267 = vmatmul.mubr.msk.f32.gmra.mxu0 %vm106_vm1, %v98_v37 }
 0x896   :  { %1310 = vmatprep.mubr.msk.f32.mxu0 %vm1500_vm0, %v1499_v1 }
 0x8f6   :  { %v544_v38 = vpop.permute.xlu1 %543 }
 0x8f7   :  { %1311 = vmatmul.mubr.msk.f32.vlgmr.msra.gmra.mxu0 %vm240_vm4, %v544_v38 }
 0x8f8   :  { %1325 = vmatpush3.msra.mxu0 %v1556_v7  ;;  %1332 = vmatprep.mubr.msk.f32.mxu0 %vm1500_vm0, %v1499_v1 }
 0x8f9   :  { %1326 = vmatprep.subr.mxu0 %v1499_v1 }
 0x8fa   :  { %1327 = vmatpush3.msra.mxu0 %v1561_v8 }
 0x8fb   :  { %1328 = vmatprep.subr.mxu0 %v1499_v1 }
 0x8fc   :  { %1329 = vmatpush3.msra.mxu0 %v1567_v10 }
 0x8fd   :  { %1330 = vmatprep.subr.mxu0 %v1499_v1 }
 0x8fe   :  { %1331 = vmatpush3.msra.mxu0 %v1574_v12 }
 0x8ff   :  { %1346 = vmatprep.subr.mxu0 %v1499_v1 }
 0x951   :  { %v1699_v16 = vpop.f32.mrf.mxu0 }
 0x953   :  { %v217_v39 = vpop.f32.mrf.mxu0 }
 0x955   :  { %v1701_v40 = vpop.f32.mrf.mxu0 }
 0x957   :  { %v1703_v41 = vpop.f32.mrf.mxu0 }
 0x9b7   :  { %v613_v42 = vpop.f32.mrf.mxu0 }
 0x9b8   :  { %v617_v43 = vadd.f32 %v1656_v2, %v613_v42 }
 0x9b9   :  { %v1312_v44 = vpop.f32.mrf.mxu0 }
 0x9ba   :  { %v1167_v45 = vmul.f32 -1.442695, %v617_v43 }
 0x9bc   :  { %1398 = vpow2.f32 %v1167_v45 }
 0x9c9   :  { %v1399_v46 = vpop.eup %1398 }
 0x9ca   :  { %v621_v47 = vadd.f32 1.0, %v1399_v46 }
 0x9cc   :  { %1400 = vrcp.f32 %v621_v47 }
 0x9d9   :  { %v1401_v48 = vpop.eup %1400 }
 0x9da   :  { %v624_v49 = vmul.f32 2.0, %v1401_v48  ;;  %v626_v53 = vmul.f32 %v1401_v48, %v535_v24 }
 0x9dc   :  { %v1168_v50 = vadd.f32 -1.0, %v624_v49 }
 0x9de   :  { %628 = vrot.lane.b32.xlu0 %v1168_v50, %s1501_s1 }
 0xa50   :  { %v629_v51 = vpop.permute.xlu0 %628 }
 0xa51   :  { %v631_v52 = vmul.f32 %v1401_v48, %v629_v51 }
 0xa53   :  { %633 = vrot.lane.b32.xlu1 %v631_v52, %s1502_s21 }
 0xac5   :  { %v634_v54 = vpop.permute.xlu1 %633 }
 0xac6   :  { %v636_v55 = vadd.f32 %v634_v54, %v626_v53 }
 0xac8   :  { %1402 = vtanh.f32 %v636_v55 }
 0xad5   :  { %v1403_v56 = vpop.eup %1402 }
 0xad6   :  { %639 = vrot.lane.b32.xlu0 %v1403_v56, %s1501_s1 }
 0xb48   :  { %v640_v57 = vpop.permute.xlu0 %639 }
 0xb49   :  { %v642_v58 = vmul.f32 %v1401_v48, %v640_v57 }
 0xb4b   :  { %644 = vrot.lane.b32.xlu1 %v642_v58, %s1502_s21 }
 0xbbd   :  { %v645_v59 = vpop.permute.xlu1 %644 }
 0xbbe   :  { %1322 = vmatmul.mubr.msk.f32.vlgmr.msra.gmra.mxu1 %vm240_vm4, %v645_v59 }
 0xbbf   :  { %1336 = vmatpush3.msra.mxu1 %v1556_v7  ;;  %1343 = vmatprep.mubr.msk.f32.mxu1 %vm1500_vm0, %v1499_v1 }
 0xbc0   :  { %1337 = vmatprep.subr.mxu1 %v1499_v1 }
 0xbc1   :  { %1338 = vmatpush3.msra.mxu1 %v1561_v8 }
 0xbc2   :  { %1339 = vmatprep.subr.mxu1 %v1499_v1 }
 0xbc3   :  { %1340 = vmatpush3.msra.mxu1 %v1567_v10 }
 0xbc4   :  { %1341 = vmatprep.subr.mxu1 %v1499_v1 }
 0xbc5   :  { %1342 = vmatpush3.msra.mxu1 %v1574_v12 }
 0xbc6   :  { %1357 = vmatprep.subr.mxu1 %v1499_v1 }
 0xc7e   :  { %v714_v60 = vpop.f32.mrf.mxu1 }
 0xc7f   :  { %v718_v61 = vadd.f32 %v714_v60, %v217_v39 }
 0xc80   :  { %v1323_v62 = vpop.f32.mrf.mxu1 }
 0xc81   :  { %v1170_v63 = vmul.f32 -1.442695, %v718_v61 }
 0xc83   :  { %1404 = vpow2.f32 %v1170_v63 }
 0xc90   :  { %v1405_v0 = vpop.eup %1404 }
 0xc91   :  { %v722_v2 = vadd.f32 1.0, %v1405_v0 }
 0xc93   :  { %1406 = vrcp.f32 %v722_v2 }
 0xca0   :  { %v1407_v3 = vpop.eup %1406 }
 0xca1   :  { %v725_v4 = vmul.f32 2.0, %v1407_v3  ;;  %v727_v11 = vmul.f32 %v1407_v3, %v636_v55 }
 0xca3   :  { %v1171_v5 = vadd.f32 -1.0, %v725_v4  ;;  %v1048_v4 = vld [vmem:[#allocation5 + $0x8] sm:$0xff] }
 0xca5   :  { %729 = vrot.lane.b32.xlu0 %v1171_v5, %s1501_s1  ;;  %v1047_v5 = vld [vmem:[#allocation5] sm:$0xff] }
 0xd17   :  { %v730_v6 = vpop.permute.xlu0 %729 }
 0xd18   :  { %v732_v9 = vmul.f32 %v1407_v3, %v730_v6 }
 0xd1a   :  { %734 = vrot.lane.b32.xlu1 %v732_v9, %s1502_s21 }
 0xd8c   :  { %v735_v13 = vpop.permute.xlu1 %734 }
 0xd8d   :  { %v737_v14 = vadd.f32 %v735_v13, %v727_v11 }
 0xd8f   :  { %1408 = vtanh.f32 %v737_v14 }
 0xd9c   :  { %v1409_v15 = vpop.eup %1408 }
 0xd9d   :  { %740 = vrot.lane.b32.xlu0 %v1409_v15, %s1501_s1 }
 0xe0f   :  { %v741_v17 = vpop.permute.xlu0 %740 }
 0xe10   :  { %v743_v18 = vmul.f32 %v1407_v3, %v741_v17  ;;  %v1049_v3 = vld [vmem:[#allocation5 + $0x10] sm:$0xff] }
 0xe12   :  { %745 = vrot.lane.b32.xlu1 %v743_v18, %s1502_s21 }
 0xe84   :  { %v746_v19 = vpop.permute.xlu1 %745 }
 0xe85   :  { %1333 = vmatmul.mubr.msk.f32.vlgmr.msra.gmra.mxu0 %vm240_vm4, %v746_v19 }
 0xe86   :  { %1347 = vmatpush3.msra.mxu0 %v1556_v7  ;;  %1354 = vmatprep.mubr.msk.f32.mxu0 %vm1500_vm0, %v1499_v1 }
 0xe87   :  { %1348 = vmatprep.subr.mxu0 %v1499_v1 }
 0xe88   :  { %1349 = vmatpush3.msra.mxu0 %v1561_v8 }
 0xe89   :  { %1350 = vmatprep.subr.mxu0 %v1499_v1 }
 0xe8a   :  { %1351 = vmatpush3.msra.mxu0 %v1567_v10 }
 0xe8b   :  { %1352 = vmatprep.subr.mxu0 %v1499_v1 }
 0xe8c   :  { %1353 = vmatpush3.msra.mxu0 %v1574_v12 }
 0xf45   :  { %v815_v20 = vpop.f32.mrf.mxu0 }
 0xf46   :  { %v819_v21 = vadd.f32 %v1699_v16, %v815_v20 }
 0xf47   :  { %v1334_v22 = vpop.f32.mrf.mxu0 }
 0xf48   :  { %v1173_v7 = vmul.f32 -1.442695, %v819_v21 }
 0xf4a   :  { %1410 = vpow2.f32 %v1173_v7 }
 0xf57   :  { %v1411_v23 = vpop.eup %1410 }
 0xf58   :  { %v823_v24 = vadd.f32 1.0, %v1411_v23 }
 0xf5a   :  { %1412 = vrcp.f32 %v823_v24 }
 0xf67   :  { %v1413_v25 = vpop.eup %1412 }
 0xf68   :  { %v826_v26 = vmul.f32 2.0, %v1413_v25  ;;  %v828_v28 = vmul.f32 %v1413_v25, %v737_v14  ;;  %v1181_v14 = vld [vmem:[%s1768_s4] ss:$0 sm:$0xff] }
 0xf6a   :  { %v1174_v8 = vadd.f32 -1.0, %v826_v26 }
 0xf6c   :  { %830 = vrot.lane.b32.xlu0 %v1174_v8, %s1501_s1 }
 0xfde   :  { %v831_v27 = vpop.permute.xlu0 %830 }
 0xfdf   :  { %v833_v10 = vmul.f32 %v1413_v25, %v831_v27 }
 0xfe1   :  { %835 = vrot.lane.b32.xlu1 %v833_v10, %s1502_s21 }
0x1053   :  { %v836_v12 = vpop.permute.xlu1 %835 }
0x1054   :  { %v838_v29 = vadd.f32 %v836_v12, %v828_v28 }
0x1056   :  { %1414 = vtanh.f32 %v838_v29 }
0x1063   :  { %v1415_v30 = vpop.eup %1414 }
0x1064   :  { %841 = vrot.lane.b32.xlu0 %v1415_v30, %s1501_s1 }
0x10d6   :  { %v842_v31 = vpop.permute.xlu0 %841 }
0x10d7   :  { %v844_v32 = vmul.f32 %v1413_v25, %v842_v31 }
0x10d9   :  { %846 = vrot.lane.b32.xlu1 %v844_v32, %s1502_s21 }
0x114b   :  { %v847_v33 = vpop.permute.xlu1 %846 }
0x114c   :  { %1344 = vmatmul.mubr.msk.f32.vlgmr.msra.gmra.mxu1 %vm240_vm4, %v847_v33 }
0x114d   :  { %1365 = vmatprep.mubr.msk.f32.mxu1 %vm1500_vm0, %v1499_v1 }
0x120c   :  { %v916_v34 = vpop.f32.mrf.mxu1 }
0x120d   :  { %v920_v35 = vadd.f32 %v916_v34, %v1703_v41 }
0x120e   :  { %v1345_v36 = vpop.f32.mrf.mxu1 }
0x120f   :  { %v1176_v37 = vmul.f32 -1.442695, %v920_v35 }
0x1211   :  { %1416 = vpow2.f32 %v1176_v37 }
0x121e   :  { %v1417_v38 = vpop.eup %1416 }
0x121f   :  { %v924_v16 = vadd.f32 1.0, %v1417_v38 }
0x1221   :  { %1418 = vrcp.f32 %v924_v16 }
0x122e   :  { %v1419_v39 = vpop.eup %1418 }
0x122f   :  { %v927_v42 = vmul.f32 2.0, %v1419_v39  ;;  %v929_v46 = vmul.f32 %v1419_v39, %v838_v29 }
0x1231   :  { %v1177_v43 = vadd.f32 -1.0, %v927_v42 }
0x1233   :  { %931 = vrot.lane.b32.xlu0 %v1177_v43, %s1501_s1 }
0x12a5   :  { %v932_v44 = vpop.permute.xlu0 %931 }
0x12a6   :  { %v934_v45 = vmul.f32 %v1419_v39, %v932_v44 }
0x12a8   :  { %936 = vrot.lane.b32.xlu1 %v934_v45, %s1502_s21 }
0x131a   :  { %v937_v47 = vpop.permute.xlu1 %936 }
0x131b   :  { %v939_v48 = vadd.f32 %v937_v47, %v929_v46 }
0x131d   :  { %1420 = vtanh.f32 %v939_v48 }
0x132a   :  { %v1421_v41 = vpop.eup %1420 }
0x132b   :  { %942 = vrot.lane.b32.xlu0 %v1421_v41, %s1501_s1 }
0x139d   :  { %v943_v49 = vpop.permute.xlu0 %942 }
0x139e   :  { %v945_v50 = vmul.f32 %v1419_v39, %v943_v49 }
0x13a0   :  { %947 = vrot.lane.b32.xlu1 %v945_v50, %s1502_s21 }
0x1412   :  { %v948_v51 = vpop.permute.xlu1 %947 }
0x1413   :  { %1355 = vmatmul.mubr.msk.f32.vlgmr.msra.gmra.mxu0 %vm240_vm4, %v948_v51 }
0x14d3   :  { %v1017_v52 = vpop.f32.mrf.mxu0 }
0x14d4   :  { %v1021_v53 = vadd.f32 %v1701_v40, %v1017_v52  ;;  %v1050_v40 = vld [vmem:[#allocation5 + $0x18] sm:$0xff] }
0x14d5   :  { %v1356_v54 = vpop.f32.mrf.mxu0  ;;  %1358 = vmatpush3.msra.mxu1 %v1050_v40 }
0x14d6   :  { %v1179_v55 = vmul.f32 -1.442695, %v1021_v53  ;;  %1359 = vmatprep.subr.mxu1 %v1499_v1 }
0x14d7   :  { %1360 = vmatpush3.msra.mxu1 %v1049_v3 }
0x14d8   :  { %1422 = vpow2.f32 %v1179_v55  ;;  %1361 = vmatprep.subr.mxu1 %v1499_v1 }
0x14d9   :  { %1362 = vmatpush3.msra.mxu1 %v1048_v4 }
0x14da   :  { %1363 = vmatprep.subr.mxu1 %v1499_v1 }
0x14db   :  { %1364 = vmatpush3.msra.mxu1 %v1047_v5 }
0x14e5   :  { %v1423_v56 = vpop.eup %1422 }
0x14e6   :  { %v1025_v57 = vadd.f32 1.0, %v1423_v56 }
0x14e8   :  { %1424 = vrcp.f32 %v1025_v57 }
0x14f5   :  { %v1425_v58 = vpop.eup %1424 }
0x14f6   :  { %v1028_v59 = vmul.f32 2.0, %v1425_v58  ;;  %v1030_v63 = vmul.f32 %v1425_v58, %v939_v48 }
0x14f8   :  { %v1180_v60 = vadd.f32 -1.0, %v1028_v59 }
0x14fa   :  { %1032 = vrot.lane.b32.xlu0 %v1180_v60, %s1501_s1 }
0x156c   :  { %v1033_v61 = vpop.permute.xlu0 %1032 }
0x156d   :  { %v1035_v62 = vmul.f32 %v1425_v58, %v1033_v61 }
0x156f   :  { %1037 = vrot.lane.b32.xlu1 %v1035_v62, %s1502_s21 }
0x15e1   :  { %v1038_v0 = vpop.permute.xlu1 %1037 }
0x15e2   :  { %v1040_v2 = vadd.f32 %v1038_v0, %v1030_v63 }
0x15e4   :  { %1426 = vtanh.f32 %v1040_v2 }
0x15f1   :  { %v1427_v6 = vpop.eup %1426 }
0x15f2   :  { %1043 = vrot.lane.b32.xlu0 %v1427_v6, %s1501_s1 }
0x1664   :  { %v1044_v9 = vpop.permute.xlu0 %1043 }
0x1665   :  { %v1046_v11 = vmul.f32 %v1425_v58, %v1044_v9 }
0x1667   :  { %1059 = vrot.lane.b32.xlu1 %v1046_v11, %s1502_s21 }
0x16d9   :  { %v1060_v13 = vpop.permute.xlu1 %1059 }
0x16da   :  { %1366 = vmatmul.mubr.msk.f32.vlgmr.msra.gmra.mxu1 %vm240_vm4, %v1060_v13 }
0x179a   :  { %v1129_v15 = vpop.f32.mrf.mxu1 }
0x179b   :  { %v1130_v17 = vadd.f32 %v1181_v14, %v1129_v15 }
0x179c   :  { %v1367_v1 = vpop.f32.mrf.mxu1 }
0x179d   :  { %1133 = vst [vmem:[#allocation7] sm:$0xff] %v1130_v17 }
0x179e   :  { %1479 = shalt.err (!%p1476_p0)
}
0x179f   :  { %1143 = dma.vmem_to_hbm [thread:$0]  %s1141_s9, 128, %s1769_s5, [#allocation4]  }
0x17a0   :  { %1492 = dma.done.wait [#allocation4], 128  }
0x17a1   :  { %1493 = vsyncadd [#allocation4], 4294967168 }
0x17a2   :  { %1147 = vsyncpa [#allocation3], 1 }
0x17a3   :  { %1148 = vsyncpa [#allocation6], 1 }
0x17a4   :  { %1149 = vsyncpa [#allocation4], 1 }

</bundles_post_ra>
